<compile_context>
chip_gen: v7x
topology: tpu7x:2x2x1
jax: 0.10.0
libtpu: 0.0.40
codegen_flags: <defaults>
</compile_context>

<pallas_src>
import functools
import numpy as np

import jax
import jax.numpy as jnp
from jax.experimental import pallas as pl
from jax.experimental.pallas import tpu as pltpu


# ----------------------------------------------------------------------------
# small helpers
# ----------------------------------------------------------------------------

def _vmem():
    return pl.BlockSpec(memory_space=pltpu.MemorySpace.VMEM)


def _pad_to(n, m):
    return ((n + m - 1) // m) * m


def _pad_axis(arr, axis, target):
    pad = target - arr.shape[axis]
    if pad <= 0:
        return arr
    widths = [(0, 0)] * arr.ndim
    widths[axis] = (0, pad)
    return jnp.pad(arr, widths)


def _vmem_capacity_bytes():
    """Physical per-core VMEM; conservative fallback if the query fails."""
    try:
        info = pltpu.get_tpu_info()
        for name in ("vmem_capacity_bytes", "vmem_size_bytes", "vmem_bytes"):
            v = getattr(info, name, None)
            if v:
                return int(v)
    except Exception:
        pass
    return 64 * 1024 * 1024          # v7x per-TensorCore VMEM (worst case)


# ----------------------------------------------------------------------------
# Pallas kernels
# ----------------------------------------------------------------------------

def _fp_resident_kernel(*refs, n_layers, drop_act):
    """Fused stack: refs = (a_hat, h_in, W0, b0, ..., W_{L-1}, b_{L-1}, out).

    A_hat (Mp, Mp) bf16, h_in (Mp, cin_p) bf16, W_i bf16, b_i f32 all VMEM
    resident. Width-aware re-association keeps the dominant Mp^2 MXU term on
    the narrower channel width; f32 accumulation, f32 bias + ReLU epilogue.
    """
    a_ref, h_ref = refs[0], refs[1]
    o_ref = refs[-1]
    wb = refs[2:-1]

    a = a_ref[...]                        # (Mp, Mp) bf16, loaded once
    h = h_ref[...]                        # (Mp, cin_p) bf16

    for i in range(n_layers):
        w_ref, b_ref = wb[2 * i], wb[2 * i + 1]
        cin_p, cout_p = int(w_ref.shape[0]), int(w_ref.shape[1])
        hb = h if h.dtype == jnp.bfloat16 else h.astype(jnp.bfloat16)
        if cin_p <= cout_p:
            ah = jnp.dot(a, hb, preferred_element_type=jnp.float32)
            y = jnp.dot(ah.astype(jnp.bfloat16), w_ref[...],
                        preferred_element_type=jnp.float32)
        else:
            hw = jnp.dot(hb, w_ref[...], preferred_element_type=jnp.float32)
            y = jnp.dot(a, hw.astype(jnp.bfloat16),
                        preferred_element_type=jnp.float32)
        y = y + b_ref[...]
        if (i != n_layers - 1) or (not drop_act):
            y = jnp.maximum(y, 0.0)
        h = y

    o_ref[...] = h.astype(o_ref.dtype)


def _gcn_panel_kernel(a_ref, h_ref, w_ref, b_ref, o_ref, *, apply_relu):
    """One GCN layer on one row panel: out = relu((A_panel @ H) @ W + b).

    A_panel (tm, Mp) is streamed/pipelined from HBM per grid step; H, W, b are
    VMEM resident (constant block index).
    """
    # TODO(synk): when cout_p < cin_p it would be cheaper to pre-project H @ W
    # once in glue and stream A against the narrower operand.
    ah = jnp.dot(a_ref[...], h_ref[...], preferred_element_type=jnp.float32)
    y = jnp.dot(ah.astype(jnp.bfloat16), w_ref[...],
                preferred_element_type=jnp.float32)
    y = y + b_ref[...]
    if apply_relu:
        y = jnp.maximum(y, 0.0)
    o_ref[...] = y.astype(o_ref.dtype)


# ----------------------------------------------------------------------------
# glue: dense GCN adjacency + kNN interpolation (plain JAX)
# ----------------------------------------------------------------------------

def build_gcn_adj(edge_index, num_nodes):
    """PyG-GCN normalized adjacency with self-loops: A_hat[dst, src]."""
    row, col = edge_index[0], edge_index[1]           # row = src, col = dst
    loops = jnp.arange(num_nodes, dtype=row.dtype)
    row = jnp.concatenate([row, loops])
    col = jnp.concatenate([col, loops])
    ones = jnp.ones(row.shape[0], jnp.float32)
    deg = jnp.zeros(num_nodes, jnp.float32).at[col].add(ones)
    dis = jnp.where(deg > 0, jax.lax.rsqrt(deg), 0.0)
    norm = dis[row] * dis[col]
    a_hat = jnp.zeros((num_nodes, num_nodes), jnp.float32).at[col, row].add(norm)
    return a_hat


def knn_interpolate(x, pos_src, batch_src, pos_tgt, batch_tgt, k):
    """torch_geometric.nn.knn_interpolate: inverse-square-distance weighted sum
    of the k nearest same-batch source features. Fully fused in XLA glue."""
    d2 = jnp.sum((pos_tgt[:, None, :] - pos_src[None, :, :]) ** 2, axis=-1)
    same = batch_tgt[:, None] == batch_src[None, :]
    d2m = jnp.where(same, d2, jnp.inf)
    neg_top, idx = jax.lax.top_k(-d2m, k)             # k nearest, same batch
    dk = -neg_top
    w = 1.0 / jnp.maximum(dk, 1e-16)                  # 1/inf -> 0 for padding
    w = w / jnp.maximum(jnp.sum(w, axis=1, keepdims=True), 1e-16)
    return jnp.sum(w[:, :, None] * x[idx], axis=1).astype(jnp.float32)


# ----------------------------------------------------------------------------
# parameter / sizing helpers
# ----------------------------------------------------------------------------

def _prepare_padded_params(layers, cin):
    """Pad each (W, b): rows to the previous padded width, cols to mult of 128."""
    padded, dims = [], []
    prev_p = _pad_to(cin, 128)
    for (w, b) in layers:
        co = int(w.shape[1])
        co_p = _pad_to(co, 128)
        wp = _pad_axis(_pad_axis(w.astype(jnp.float32), 0, prev_p), 1, co_p)
        padded.append((wp.astype(jnp.bfloat16),
                       _pad_axis(b.reshape(1, -1).astype(jnp.float32), 1, co_p)))
        dims.append((prev_p, co_p))
        prev_p = co_p
    return padded, dims


def _resident_vmem_estimate(Mp, cin_p, dims, out_itemsize):
    maxw = max([cin_p] + [co for _, co in dims])
    est = Mp * Mp * 2                                   # A_hat bf16
    est += Mp * cin_p * 2                               # input activation bf16
    est += sum(ci * co * 2 + co * 4 for ci, co in dims)
    est += Mp * dims[-1][1] * out_itemsize              # output
    est += 3 * Mp * maxw * 4                            # f32 temps / recasts
    return est


def _choose_panel(M, cin_p, dims, out_itemsize, vmem_limit):
    maxw = max([cin_p] + [co for _, co in dims])
    w_bytes = sum(ci * co * 2 + co * 4 for ci, co in dims)
    for tm in (512, 256, 128):
        Mp = _pad_to(max(M, tm), tm)
        est = (2 * tm * Mp * 2            # A row panel, double buffered
               + 2 * Mp * maxw * 2        # resident activation (2x headroom)
               + 2 * w_bytes              # weights / bias
               + 2 * tm * maxw * max(out_itemsize, 2)   # out panel
               + 2 * tm * maxw * 4)       # f32 temporaries
        if est <= int(vmem_limit * 0.9):
            return tm, Mp
    return 128, _pad_to(max(M, 128), 128)


# ----------------------------------------------------------------------------
# execution paths
# ----------------------------------------------------------------------------

def _fp_forward_xla(a_hat, h_in, layers, drop_act):
    """Small-graph bypass / f32 reference path."""
    n = len(layers)
    h = h_in
    for i, (w, b) in enumerate(layers):
        h = a_hat @ (h @ w) + b[None, :]
        if (i != n - 1) or (not drop_act):
            h = jnp.maximum(h, 0.0)
    return h


def _fp_forward_resident(a_hat, h_in, padded_params, dims, drop_act,
                         out_dtype, vmem_limit):
    M = a_hat.shape[0]
    Mp = _pad_to(max(M, 16), 16)                       # bf16 sublane packing
    cin_p = dims[0][0]
    cout_p = dims[-1][1]

    a_p = _pad_axis(_pad_axis(a_hat, 0, Mp), 1, Mp).astype(jnp.bfloat16)
    h_p = _pad_axis(_pad_axis(h_in, 0, Mp), 1, cin_p).astype(jnp.bfloat16)

    ins = [a_p, h_p]
    for wp, bp in padded_params:
        ins += [wp, bp]

    flops = 0
    for ci, co in dims:
        flops += 2 * Mp * Mp * min(ci, co) + 2 * Mp * ci * co
    bytes_acc = sum(int(np.prod(t.shape)) * t.dtype.itemsize for t in ins)
    bytes_acc += Mp * cout_p * jnp.dtype(out_dtype).itemsize

    kern = functools.partial(_fp_resident_kernel,
                             n_layers=len(padded_params), drop_act=drop_act)
    return pl.pallas_call(
        kern,
        out_shape=jax.ShapeDtypeStruct((Mp, cout_p), out_dtype),
        in_specs=[_vmem()] * len(ins),
        out_specs=_vmem(),
        compiler_params=pltpu.CompilerParams(vmem_limit_bytes=int(vmem_limit)),
        cost_estimate=pl.CostEstimate(flops=int(flops), transcendentals=0,
                                      bytes_accessed=int(bytes_acc)),
    )(*ins)


def _fp_forward_streamed(a_hat, h_in, padded_params, dims, drop_act,
                         out_dtype, vmem_limit):
    M = a_hat.shape[0]
    cin_p = dims[0][0]
    out_itemsize = jnp.dtype(out_dtype).itemsize
    tm, Mp = _choose_panel(M, cin_p, dims, out_itemsize, vmem_limit)
    n_panels = Mp // tm

    a_p = _pad_axis(_pad_axis(a_hat, 0, Mp), 1, Mp).astype(jnp.bfloat16)
    h = _pad_axis(_pad_axis(h_in, 0, Mp), 1, cin_p).astype(jnp.bfloat16)

    n_layers = len(padded_params)
    for i, ((wp, bp), (ci_p, co_p)) in enumerate(zip(padded_params, dims)):
        last = i == n_layers - 1
        relu = (not last) or (not drop_act)
        dt = out_dtype if last else jnp.bfloat16
        flops = 2 * Mp * Mp * ci_p + 2 * Mp * ci_p * co_p
        bytes_acc = (Mp * Mp * 2 + Mp * ci_p * 2 + ci_p * co_p * 2 + co_p * 4
                     + Mp * co_p * jnp.dtype(dt).itemsize)
        kern = functools.partial(_gcn_panel_kernel, apply_relu=relu)
        h = pl.pallas_call(
            kern,
            out_shape=jax.ShapeDtypeStruct((Mp, co_p), dt),
            grid_spec=pltpu.PrefetchScalarGridSpec(
                num_scalar_prefetch=0,
                grid=(n_panels,),
                in_specs=[
                    pl.BlockSpec((tm, Mp), lambda p: (p, 0)),     # A row panel
                    pl.BlockSpec((Mp, ci_p), lambda p: (0, 0)),   # resident H
                    pl.BlockSpec((ci_p, co_p), lambda p: (0, 0)),  # W resident
                    pl.BlockSpec((1, co_p), lambda p: (0, 0)),     # b resident
                ],
                out_specs=pl.BlockSpec((tm, co_p), lambda p: (p, 0)),
            ),
            compiler_params=pltpu.CompilerParams(
                dimension_semantics=("parallel",),
                vmem_limit_bytes=int(vmem_limit)),
            cost_estimate=pl.CostEstimate(flops=int(flops), transcendentals=0,
                                          bytes_accessed=int(bytes_acc)),
        )(a_p, h, wp, bp)
    return h


# ----------------------------------------------------------------------------
# FPModule forward (mirrors PyTorch FPModule.forward)
# ----------------------------------------------------------------------------

def fp_module_forward(params, x, pos, batch, x_skip, pos_skip, batch_skip,
                      edge_index, *, k=3, drop_act=False,
                      out_dtype=jnp.bfloat16, a_hat=None, force_path=None,
                      small_graph_threshold=256):
    layers = params["w"]                                # list of (W (cin,cout), b)
    M = pos_skip.shape[0]
    cout = int(layers[-1][0].shape[1])

    # dense normalized adjacency (cache by passing a_hat= when edges are static)
    if a_hat is None:
        a_hat = build_gcn_adj(edge_index, M)            # (M, M) f32

    # kNN interpolation + concat with the skip features, fully in glue
    x_int = knn_interpolate(x, pos, batch, pos_skip, batch_skip, k)
    if x_skip is not None:
        h_in = jnp.concatenate([x_int, x_skip.astype(jnp.float32)], axis=1)
    else:
        h_in = x_int
    cin = int(h_in.shape[1])
    cin_p = _pad_to(cin, 128)

    padded_params, dims = _prepare_padded_params(layers, cin)
    out_itemsize = jnp.dtype(out_dtype).itemsize

    cap = _vmem_capacity_bytes()
    vmem_limit = max(32 * 1024 * 1024, min(100 * 1024 * 1024, int(cap * 0.80)))

    path = force_path
    if path is None:
        if M <= small_graph_threshold:
            path = "xla"
        else:
            Mp16 = _pad_to(max(M, 16), 16)
            est = _resident_vmem_estimate(Mp16, cin_p, dims, out_itemsize)
            path = "resident" if est <= vmem_limit else "streamed"

    if path == "xla":
        out = _fp_forward_xla(a_hat, h_in, layers, drop_act).astype(out_dtype)
        return out, pos_skip, batch_skip
    elif path == "resident":
        out_p = _fp_forward_resident(a_hat, h_in, padded_params, dims,
                                     drop_act, out_dtype, vmem_limit)
    elif path == "streamed":
        out_p = _fp_forward_streamed(a_hat, h_in, padded_params, dims,
                                     drop_act, out_dtype, vmem_limit)
    else:
        raise ValueError(f"unknown path: {path}")

    return out_p[:M, :cout], pos_skip, batch_skip


# ----------------------------------------------------------------------------
# deterministic synthetic parameters (shapes from FPModule.__init__)
# ----------------------------------------------------------------------------

def init_fp_params(key, in_channels, hidden_channels, out_channels, n_layers):
    dims = []
    for i in range(n_layers):
        cin = in_channels if i == 0 else hidden_channels
        cout = out_channels if i == n_layers - 1 else hidden_channels
        dims.append((cin, cout))
    keys = jax.random.split(key, n_layers)
    layers = []
    for kk, (cin, cout) in zip(keys, dims):
        w = jax.random.normal(kk, (cin, cout), jnp.float32) * (1.0 / np.sqrt(cin))
        b = jnp.zeros((cout,), jnp.float32)
        layers.append((w, b))
    return {"w": layers}


def ring_edges(segments):
    rows, cols = [], []
    for start, n in segments:
        for i in range(n):
            a = start + i
            b = start + (i + 1) % n
            rows += [a, b]
            cols += [b, a]
    return jnp.array([rows, cols], dtype=jnp.int32)


# ----------------------------------------------------------------------------
# example
# ----------------------------------------------------------------------------

if __name__ == "__main__":
    key = jax.random.PRNGKey(0)
    k_feat, k_pos, k_skip, k_posskip, k_par = jax.random.split(key, 5)

    N_COARSE, N_FINE = 96, 384
    C_X, C_SKIP, HIDDEN, C_OUT = 32, 16, 64, 32
    N_LAYERS, K = 2, 3
    # NOTE: HIDDEN is padded to 128 lanes for the MXU; choosing hidden widths
    # that are multiples of 128 (ideally 256 on v6e/v7x) avoids wasted FLOPs.

    # coarse-level inputs (to be interpolated up)
    x = jax.random.normal(k_feat, (N_COARSE, C_X), jnp.float32)
    pos = jax.random.normal(k_pos, (N_COARSE, 3), jnp.float32)
    batch = jnp.concatenate([jnp.zeros(N_COARSE // 2, jnp.int32),
                             jnp.ones(N_COARSE // 2, jnp.int32)])

    # fine-level (skip) inputs
    x_skip = jax.random.normal(k_skip, (N_FINE, C_SKIP), jnp.float32)
    pos_skip = jax.random.normal(k_posskip, (N_FINE, 3), jnp.float32)
    batch_skip = jnp.concatenate([jnp.zeros(N_FINE // 2, jnp.int32),
                                  jnp.ones(N_FINE // 2, jnp.int32)])

    # fine-level graph: ring within each batch segment
    edge_index = ring_edges([(0, N_FINE // 2), (N_FINE // 2, N_FINE // 2)])

    params = init_fp_params(k_par, C_X + C_SKIP, HIDDEN, C_OUT, N_LAYERS)

    def run(path, dt):
        fwd = jax.jit(functools.partial(fp_module_forward, k=K, drop_act=False,
                                        out_dtype=dt, force_path=path))
        return fwd(params, x, pos, batch, x_skip, pos_skip, batch_skip,
                   edge_index)

    ref, _, _ = run("xla", jnp.float32)                 # f32 reference / bypass
    out_res, _, _ = run("resident", jnp.bfloat16)       # fused resident kernel
    out_str, pos_out, batch_out = run("streamed", jnp.bfloat16)  # row-panel grid
    jax.block_until_ready((ref, out_res, out_str))

    assert ref.shape == (N_FINE, C_OUT)
    ref_norm = jnp.maximum(jnp.linalg.norm(ref), 1e-6)
    for o in (out_res, out_str):
        assert o.shape == (N_FINE, C_OUT)
        assert bool(jnp.all(jnp.isfinite(o)))
        rel = float(jnp.linalg.norm(o.astype(jnp.float32) - ref) / ref_norm)
        assert rel < 5e-2, f"relative error too large: {rel}"
    assert pos_out.shape == pos_skip.shape and batch_out.shape == batch_skip.shape
    print("KERNEL_OK")
</pallas_src>

<mosaic_0001>
module attributes {stable_mosaic.version = 11 : i64} {
  func.func private @main(%arg0: i32) attributes {dimension_semantics = [#tpu.dimension_semantics<core_parallel>], iteration_bounds = array<i64: 2>, tpu.core_type = #tpu.core_type<sc_scalar_subcore>, window_params = []} {
    return
  }
}

module attributes {stable_mosaic.version = 11 : i64} {
  func.func private @main(%arg0: i32) attributes {dimension_semantics = [#tpu.dimension_semantics<core_parallel>], iteration_bounds = array<i64: 2>, tpu.core_type = #tpu.core_type<sc_scalar_subcore>, window_params = []} {
    return
  }
}

</mosaic_0001>

<bundles_post_ra>
// kernel: mul.5
= control target key start
LH: loop header
LB: loop body
LE: loop exit
PB: predicated region body
PF: predicated region fallthrough
CT: control target
= control target key end

     0   :  { %s56_s0 = inlined_call_operand.vmem [shape: f32[1152], index: 0, kind: input, shape index: {}]   ;;  %s57_s1 = inlined_call_operand.vmem [shape: f32[1152], index: 1, kind: input, shape index: {}]   ;;  %s58_s2 = inlined_call_operand.vmem [shape: f32[1152], index: 2, kind: output, shape index: {}]  }
   0x1   :  { %v3_v0 = vld [vmem:[%s56_s0] sm:$0xff]  ;;  %v20_v2 = vld [vmem:[%s56_s0 + $0x8] sm:$0xff] }
   0x2   :  { %v4_v1 = vld [vmem:[%s57_s1] sm:$0xff]  ;;  %v21_v4 = vld [vmem:[%s57_s1 + $0x8] sm:$0xff] }
   0x3   :  { %v7_v3 = vmul.f32 %v4_v1, %v3_v0  ;;  %v16_v5 = vmul.f32 %v21_v4, %v20_v2 }
   0x5   :  { %9 = vst [vmem:[%s58_s2] sm:$0xff] %v7_v3  ;;  %22 = vst [vmem:[%s58_s2 + $0x8] sm:$0xff] %v16_v5 }

</bundles_post_ra>
